<compile_context>
chip_gen: v5e
topology: v5e:2x2
jax: 0.10.0
libtpu: 0.0.40
codegen_flags: <defaults>
</compile_context>

<pallas_src>
import functools
import math

import numpy as np
import jax
import jax.numpy as jnp
from jax.experimental import pallas as pl
from jax.experimental.pallas import tpu as pltpu


# ---------------------------------------------------------------------------
# Host-side: small constant pooling / upsampling matrices (numpy).
# ---------------------------------------------------------------------------
def _adaptive_pool_matrix(in_size: int, out_size: int) -> np.ndarray:
    """P[i, j] such that pooled[i] = sum_j P[i, j] * x[j] (PyTorch adaptive_avg_pool)."""
    P = np.zeros((out_size, in_size), dtype=np.float32)
    for i in range(out_size):
        start = (i * in_size) // out_size
        end = -(-((i + 1) * in_size) // out_size)  # ceil
        P[i, start:end] = 1.0 / (end - start)
    return P


def _bilinear_upsample_matrix(out_size: int, in_size: int) -> np.ndarray:
    """U[i, j] such that up[i] = sum_j U[i, j] * x[j] (bilinear, align_corners=True)."""
    U = np.zeros((out_size, in_size), dtype=np.float32)
    if in_size == 1:
        U[:, 0] = 1.0
        return U
    for i in range(out_size):
        src = 0.0 if out_size == 1 else i * (in_size - 1) / (out_size - 1)
        lo = int(math.floor(src))
        hi = min(lo + 1, in_size - 1)
        frac = src - lo
        U[i, lo] += 1.0 - frac
        U[i, hi] += frac
    return U


# ---------------------------------------------------------------------------
# Pallas kernel: one grid step = one batch element, ALL branches + identity.
# ---------------------------------------------------------------------------
def _fpp_kernel(x_ref, pk_ref, uk_ref, w_ref, mask_ref, b_ref, o_ref, *,
                compute_dtype):
    C = x_ref.shape[1]
    x = x_ref[0]                                        # (C, HW), input dtype

    # Identity passthrough: first C output channels are x itself (exact).
    o_ref[0, :C, :] = x.astype(o_ref.dtype)

    xc = x.astype(compute_dtype)
    # 1) adaptive average pooling of every pyramid level in ONE matmul.
    pooled = jnp.dot(xc, pk_ref[...],
                     preferred_element_type=jnp.float32)          # (C, S) f32
    # 2) 1x1 convs of every branch in ONE stacked matmul (B*C, S).
    conv = jnp.dot(w_ref[...], pooled.astype(compute_dtype),
                   preferred_element_type=jnp.float32)            # (B*C, S) f32
    #    Block-diagonal selection: zero out cross-branch columns (f32 VPU op).
    conv = conv * mask_ref[...]
    # 3) bilinear upsample of every branch in ONE matmul, lane-dense HW output.
    up = jnp.dot(conv.astype(compute_dtype), uk_ref[...],
                 preferred_element_type=jnp.float32)              # (B*C, HW) f32
    # 4) conv bias, added after the upsample (upsampling a constant is exact).
    up = up + b_ref[...]                                          # (B*C, 1) bcast
    o_ref[0, C:, :] = up.astype(o_ref.dtype)


# ---------------------------------------------------------------------------
# Module-equivalent forward.
# ---------------------------------------------------------------------------
def feature_pyramid_pooling(x, pool_sizes, weights, biases, *,
                            compute_dtype=jnp.float32):
    """x: (N, C, H, W), NCHW (same convention as the PyTorch module)."""
    N, C, H, W = x.shape
    HW = H * W
    B = len(pool_sizes)
    OC = (1 + B) * C
    x_flat = x.reshape(N, C, HW)

    # Build batched constant matrices on the host.
    pk_cols, uk_rows, sizes_sq = [], [], []
    for s in pool_sizes:
        Ph = _adaptive_pool_matrix(H, s)
        Pw = _adaptive_pool_matrix(W, s)
        Uh = _bilinear_upsample_matrix(H, s)
        Uw = _bilinear_upsample_matrix(W, s)
        pk_cols.append(np.kron(Ph, Pw).T)      # (HW, s*s)
        uk_rows.append(np.kron(Uh, Uw).T)      # (s*s, HW)
        sizes_sq.append(s * s)
    S = sum(sizes_sq)
    pk_all = np.concatenate(pk_cols, axis=1)   # (HW, S)
    uk_all = np.concatenate(uk_rows, axis=0)   # (S, HW)

    # 0/1 block-diagonal mask: branch b's channel rows see only its s^2 columns.
    mask_np = np.zeros((B * C, S), dtype=np.float32)
    off = 0
    for b, s2 in enumerate(sizes_sq):
        mask_np[b * C:(b + 1) * C, off:off + s2] = 1.0
        off += s2

    w_stack = jnp.concatenate(
        [jnp.asarray(w, jnp.float32) for w in weights], axis=0)          # (B*C, C)
    b_stack = jnp.concatenate(
        [jnp.asarray(b, jnp.float32) for b in biases]).reshape(B * C, 1)  # (B*C, 1)

    pk_all = jnp.asarray(pk_all).astype(compute_dtype)
    uk_all = jnp.asarray(uk_all).astype(compute_dtype)
    mask = jnp.asarray(mask_np)                 # stays f32 (applied to f32 acc)
    w_stack = w_stack.astype(compute_dtype)
    # bias stays f32: added after the f32-accumulated matmul chain.

    itemsize = jnp.dtype(x.dtype).itemsize
    cdsize = jnp.dtype(compute_dtype).itemsize
    flops_per_n = (2 * C * HW * S            # pooling matmul
                   + 2 * (B * C) * C * S     # stacked 1x1 conv
                   + (B * C) * S             # mask multiply
                   + 2 * (B * C) * S * HW    # stacked upsample
                   + (B * C) * HW)           # bias add
    bytes_accessed = (N * C * HW * itemsize          # x read
                      + N * OC * HW * itemsize       # out write
                      + 2 * S * HW * cdsize          # pk + uk
                      + (B * C) * (C + S) * cdsize   # weights + mask
                      + (B * C) * 4)                 # bias

    kernel = functools.partial(_fpp_kernel, compute_dtype=compute_dtype)
    out_flat = pl.pallas_call(
        kernel,
        out_shape=jax.ShapeDtypeStruct((N, OC, HW), x.dtype),
        grid_spec=pltpu.PrefetchScalarGridSpec(
            num_scalar_prefetch=0,
            grid=(N,),
            in_specs=[
                pl.BlockSpec((1, C, HW), lambda n: (n, 0, 0)),   # x slab, batch n
                pl.BlockSpec((HW, S), lambda n: (0, 0)),         # batched pooling mat
                pl.BlockSpec((S, HW), lambda n: (0, 0)),         # batched upsample mat
                pl.BlockSpec((B * C, C), lambda n: (0, 0)),      # stacked 1x1 weights
                pl.BlockSpec((B * C, S), lambda n: (0, 0)),      # branch mask (f32)
                pl.BlockSpec((B * C, 1), lambda n: (0, 0)),      # stacked biases (f32)
            ],
            out_specs=pl.BlockSpec((1, OC, HW), lambda n: (n, 0, 0)),
        ),
        compiler_params=pltpu.CompilerParams(
            dimension_semantics=("parallel",),
            # Explicit scoped-VMEM budget; safe on v5e/v6e (128 MiB physical)
            # and v7x (64 MiB physical).  At these tile sizes usage is << 1 MiB.
            vmem_limit_bytes=32 * 1024 * 1024,
        ),
        cost_estimate=pl.CostEstimate(
            flops=int(N * flops_per_n),
            transcendentals=0,
            bytes_accessed=int(bytes_accessed),
        ),
    )(x_flat, pk_all, uk_all, w_stack, mask, b_stack)
    return out_flat.reshape(N, OC, H, W)


# ---------------------------------------------------------------------------
# Pure-JAX reference implementing identical math (correctness check).
# ---------------------------------------------------------------------------
def _reference(x, pool_sizes, weights, biases):
    N, C, H, W = x.shape
    feats = [x]
    for s, w, b in zip(pool_sizes, weights, biases):
        Ph = jnp.asarray(_adaptive_pool_matrix(H, s))
        Pw = jnp.asarray(_adaptive_pool_matrix(W, s))
        Uh = jnp.asarray(_bilinear_upsample_matrix(H, s))
        Uw = jnp.asarray(_bilinear_upsample_matrix(W, s))
        pooled = jnp.einsum("sh,nchw,tw->ncst", Ph, x, Pw)
        conv = jnp.einsum("oc,ncst->nost", w, pooled) + b[None, :, None, None]
        up = jnp.einsum("hs,ncst,wt->nchw", Uh, conv, Uw)
        feats.append(up)
    return jnp.concatenate(feats, axis=1)


if __name__ == "__main__":
    # small deterministic config
    N, C, H, W = 2, 4, 16, 16
    pool_sizes = (1, 2, 4)

    key = jax.random.PRNGKey(0)
    kx, *kps = jax.random.split(key, 1 + 2 * len(pool_sizes))
    x = jax.random.normal(kx, (N, C, H, W), dtype=jnp.float32)

    weights, biases = [], []
    for i in range(len(pool_sizes)):
        kw, kb = kps[2 * i], kps[2 * i + 1]
        bound = 1.0 / math.sqrt(C)  # Conv2d(k=1) default init range
        weights.append(jax.random.uniform(kw, (C, C), jnp.float32, -bound, bound))
        biases.append(jax.random.uniform(kb, (C,), jnp.float32, -bound, bound))

    ref = _reference(x, pool_sizes, weights, biases)

    # 1) exact-math path: f32 operands, tight tolerance.
    out_f32 = feature_pyramid_pooling(x, pool_sizes, weights, biases,
                                      compute_dtype=jnp.float32)
    out_f32 = jax.block_until_ready(out_f32)
    assert out_f32.shape == (N, C * (1 + len(pool_sizes)), H, W), out_f32.shape
    np.testing.assert_allclose(np.asarray(out_f32), np.asarray(ref),
                               rtol=1e-3, atol=1e-3)

    # 2) fast path: bf16 matmul operands, f32 accumulation (halves constant /
    #    VMEM traffic, doubles MXU rate on v6e/v7x).  Looser tolerance vs the
    #    f32 reference accounts for bf16 operand rounding only.
    out_bf16 = feature_pyramid_pooling(x, pool_sizes, weights, biases,
                                       compute_dtype=jnp.bfloat16)
    out_bf16 = jax.block_until_ready(out_bf16)
    np.testing.assert_allclose(np.asarray(out_bf16), np.asarray(ref),
                               rtol=3e-2, atol=3e-2)

    print("KERNEL_OK")
</pallas_src>

<mosaic_0001>
module attributes {stable_mosaic.version = 11 : i64} {
  func.func @_fpp_kernel(%arg0: i32, %arg1: memref<1x4x256xf32, #tpu.memory_space<vmem>>, %arg2: memref<256x21xf32, #tpu.memory_space<vmem>>, %arg3: memref<21x256xf32, #tpu.memory_space<vmem>>, %arg4: memref<12x4xf32, #tpu.memory_space<vmem>>, %arg5: memref<12x21xf32, #tpu.memory_space<vmem>>, %arg6: memref<12x1xf32, #tpu.memory_space<vmem>>, %arg7: memref<1x16x256xf32, #tpu.memory_space<vmem>>) attributes {dimension_semantics = [#tpu.dimension_semantics<parallel>], iteration_bounds = array<i64: 2>, scalar_prefetch = 0 : i64, scratch_operands = 0 : i64, tpu.core_type = #tpu.core_type<tc>, window_params = [{transform_indices = @transform_0, window_bounds = array<i64: 1, 4, 256>}, {pipeline_mode = #tpu.pipeline_mode<synchronous>, transform_indices = @transform_1, window_bounds = array<i64: 256, 21>}, {pipeline_mode = #tpu.pipeline_mode<synchronous>, transform_indices = @transform_2, window_bounds = array<i64: 21, 256>}, {pipeline_mode = #tpu.pipeline_mode<synchronous>, transform_indices = @transform_3, window_bounds = array<i64: 12, 4>}, {pipeline_mode = #tpu.pipeline_mode<synchronous>, transform_indices = @transform_4, window_bounds = array<i64: 12, 21>}, {pipeline_mode = #tpu.pipeline_mode<synchronous>, transform_indices = @transform_5, window_bounds = array<i64: 12, 1>}, {transform_indices = @transform_6, window_bounds = array<i64: 1, 16, 256>}]} {
    %c0 = arith.constant 0 : index
    %c0_0 = arith.constant 0 : index
    %c0_1 = arith.constant 0 : index
    %0 = vector.load %arg1[%c0, %c0_0, %c0_1] : memref<1x4x256xf32, #tpu.memory_space<vmem>>, vector<1x4x256xf32>
    %1 = vector.shape_cast %0 : vector<1x4x256xf32> to vector<4x256xf32>
    %c0_2 = arith.constant 0 : index
    %c0_3 = arith.constant 0 : index
    %c0_4 = arith.constant 0 : index
    %2 = vector.load %arg7[%c0_2, %c0_3, %c0_4] : memref<1x16x256xf32, #tpu.memory_space<vmem>>, vector<1x4x256xf32>
    %3 = vector.shape_cast %2 : vector<1x4x256xf32> to vector<4x256xf32>
    %4 = vector.shape_cast %1 : vector<4x256xf32> to vector<1x4x256xf32>
    tpu.vector_store %arg7[%c0_2, %c0_3, %c0_4], %4 {strides = array<i32>} : memref<1x16x256xf32, #tpu.memory_space<vmem>>, vector<1x4x256xf32>,
    %c0_5 = arith.constant 0 : index
    %c0_6 = arith.constant 0 : index
    %5 = vector.load %arg2[%c0_5, %c0_6] : memref<256x21xf32, #tpu.memory_space<vmem>>, vector<256x21xf32>
    %cst = arith.constant dense<0.000000e+00> : vector<4x21xf32>
    %6 = tpu.matmul %1, %5, %cst {dimension_numbers = #tpu.dot_dimension_numbers<[1], [0], [0], [1], [0, 0, 1, 1], [], []>} : vector<4x256xf32>, vector<256x21xf32>, vector<4x21xf32> -> vector<4x21xf32>
    %c0_7 = arith.constant 0 : index
    %c0_8 = arith.constant 0 : index
    %7 = vector.load %arg4[%c0_7, %c0_8] : memref<12x4xf32, #tpu.memory_space<vmem>>, vector<12x4xf32>
    %cst_9 = arith.constant dense<0.000000e+00> : vector<12x21xf32>
    %8 = tpu.matmul %7, %6, %cst_9 {dimension_numbers = #tpu.dot_dimension_numbers<[1], [0], [0], [1], [0, 0, 1, 1], [], []>} : vector<12x4xf32>, vector<4x21xf32>, vector<12x21xf32> -> vector<12x21xf32>
    %c0_10 = arith.constant 0 : index
    %c0_11 = arith.constant 0 : index
    %9 = vector.load %arg5[%c0_10, %c0_11] : memref<12x21xf32, #tpu.memory_space<vmem>>, vector<12x21xf32>
    %10 = arith.mulf %8, %9 : vector<12x21xf32>
    %c0_12 = arith.constant 0 : index
    %c0_13 = arith.constant 0 : index
    %11 = vector.load %arg3[%c0_12, %c0_13] : memref<21x256xf32, #tpu.memory_space<vmem>>, vector<21x256xf32>
    %cst_14 = arith.constant dense<0.000000e+00> : vector<12x256xf32>
    %12 = tpu.matmul %10, %11, %cst_14 {dimension_numbers = #tpu.dot_dimension_numbers<[1], [0], [0], [1], [0, 0, 1, 1], [], []>} : vector<12x21xf32>, vector<21x256xf32>, vector<12x256xf32> -> vector<12x256xf32>
    %c0_15 = arith.constant 0 : index
    %c0_16 = arith.constant 0 : index
    %13 = vector.load %arg6[%c0_15, %c0_16] : memref<12x1xf32, #tpu.memory_space<vmem>>, vector<12x1xf32>
    %14 = vector.broadcast %13 : vector<12x1xf32> to vector<12x256xf32>
    %15 = arith.addf %12, %14 : vector<12x256xf32>
    %c0_17 = arith.constant 0 : index
    %c4 = arith.constant 4 : index
    %c0_18 = arith.constant 0 : index
    %16 = vector.load %arg7[%c0_17, %c4, %c0_18] : memref<1x16x256xf32, #tpu.memory_space<vmem>>, vector<1x12x256xf32>
    %17 = vector.shape_cast %16 : vector<1x12x256xf32> to vector<12x256xf32>
    %18 = vector.shape_cast %15 : vector<12x256xf32> to vector<1x12x256xf32>
    tpu.vector_store %arg7[%c0_17, %c4, %c0_18], %18 {strides = array<i32>} : memref<1x16x256xf32, #tpu.memory_space<vmem>>, vector<1x12x256xf32>,
    return
  }
  func.func @transform_0(%arg0: i32) -> (i32, i32, i32) {
    %c0_i32 = arith.constant 0 : i32
    %c0_i32_0 = arith.constant 0 : i32
    %c0_i32_1 = arith.constant 0 : i32
    return %arg0, %c0_i32, %c0_i32_0 : i32, i32, i32
  }
  func.func @transform_1(%arg0: i32) -> (i32, i32) {
    %c0_i32 = arith.constant 0 : i32
    %c0_i32_0 = arith.constant 0 : i32
    %c0_i32_1 = arith.constant 0 : i32
    return %c0_i32, %c0_i32_0 : i32, i32
  }
  func.func @transform_2(%arg0: i32) -> (i32, i32) {
    %c0_i32 = arith.constant 0 : i32
    %c0_i32_0 = arith.constant 0 : i32
    %c0_i32_1 = arith.constant 0 : i32
    return %c0_i32, %c0_i32_0 : i32, i32
  }
  func.func @transform_3(%arg0: i32) -> (i32, i32) {
    %c0_i32 = arith.constant 0 : i32
    %c0_i32_0 = arith.constant 0 : i32
    %c0_i32_1 = arith.constant 0 : i32
    return %c0_i32, %c0_i32_0 : i32, i32
  }
  func.func @transform_4(%arg0: i32) -> (i32, i32) {
    %c0_i32 = arith.constant 0 : i32
    %c0_i32_0 = arith.constant 0 : i32
    %c0_i32_1 = arith.constant 0 : i32
    return %c0_i32, %c0_i32_0 : i32, i32
  }
  func.func @transform_5(%arg0: i32) -> (i32, i32) {
    %c0_i32 = arith.constant 0 : i32
    %c0_i32_0 = arith.constant 0 : i32
    %c0_i32_1 = arith.constant 0 : i32
    return %c0_i32, %c0_i32_0 : i32, i32
  }
  func.func @transform_6(%arg0: i32) -> (i32, i32, i32) {
    %c0_i32 = arith.constant 0 : i32
    %c0_i32_0 = arith.constant 0 : i32
    %c0_i32_1 = arith.constant 0 : i32
    return %arg0, %c0_i32, %c0_i32_0 : i32, i32, i32
  }
}

</mosaic_0001>

<bundles_post_ra>
// kernel: tpu_custom_call.1
= control target key start
LH: loop header
LB: loop body
LE: loop exit
PB: predicated region body
PF: predicated region fallthrough
CT: control target
= control target key end

     0   :  { %11 = vsyncpa [#allocation3], 0  ;;  %s951_s0 = inlined_call_operand.vmem [shape: f32[2,4,256], index: 0, kind: input, shape index: {}]   ;;  %s952_s1 = inlined_call_operand.vmem [shape: f32[256,21], index: 1, kind: input, shape index: {}]   ;;  %s953_s2 = inlined_call_operand.vmem [shape: f32[21,256], index: 2, kind: input, shape index: {}]   ;;  %s954_s3 = inlined_call_operand.vmem [shape: f32[12,4], index: 3, kind: input, shape index: {}]   ;;  %s955_s4 = inlined_call_operand.vmem [shape: f32[12,21], index: 4, kind: input, shape index: {}]   ;;  %s956_s5 = inlined_call_operand.vmem [shape: f32[12,1], index: 5, kind: input, shape index: {}]   ;;  %s957_s6 = inlined_call_operand.hbm [shape: f32[2,16,256], index: 6, kind: output, shape index: {}]  }
   0x1   :  { %13 = vsyncpa [#allocation3 + $0x1], 0  ;;  %s718_s21 = smov 0   ;;  %s720_s22 = smov 0  }
   0x2   :  { %s722_s23 = smov 0   ;;  %s724_s24 = smov 0  }
   0x3 LB: > { %s739_s25 = sadd.s32 4294967295, %s678_s24   ;;  %s550_s26 = sadd.s32 4294967294, %s678_s24   ;;  %s678_s24 = sphi %s724_s24, %s963_s24   ;;  %s674_s23 = sphi %s722_s23, %s962_s23   ;;  %s670_s22 = sphi %s720_s22, %s961_s22   ;;  %s666_s21 = sphi %s718_s21, %s960_s21  }
   0x4   : > { %s743_s27 = sadd.s32 1, %s678_s24   ;;  %s157_s28 = sadd.s32 1, %s674_s23 }
   0x5   : > { %s154_s29 = ssub.s32 %s678_s24, %s743_s27  ;;  %p167_p0 = scmp.ne.s32.totalorder %s674_s23, %s670_s22 }
   0x6   : > { %p155_p1 = scmp.eq.s32.totalorder %s154_s29, 0  ;;  %p168_p2 = scmp.eq.s32.totalorder %s739_s25, 1 }
   0x7   : > { %p173_p3 = scmp.ne.s32.totalorder %s670_s22, %s666_s21  ;;  %p174_p4 = scmp.eq.s32.totalorder %s550_s26, 1 }
   0x8   : > { %s754_s30 = scalar_select %p155_p1, %s674_s23, %s157_s28  }
   0x9   : > { %p756_p5 = por %p168_p2, %p167_p0  ;;  %p760_p6 = por %p174_p4, %p173_p3 }
   0xa   : > { %p553_p7 = scmp.ge.s32.totalorder %s678_s24, 1  ;;  %p215_p8 = scmp.lt.s32.totalorder %s678_s24, 3 }
   0xc   : > { %p216_p9 = pnand %p553_p7, %p215_p8 }
   0xd   : > { %p245_p10 = scmp.lt.s32.totalorder (!%p216_p9), %s739_s25, 1  ;;  %s242_s20 = sand.u32 (!%p216_p9), 1, %s670_s22  }
   0xe   : > { %219 = sbr.rel (%p216_p9) target bundleno = 465 (0x1d1), region = 44  ;;  %s572_s15 = sshll.u32 (!%p216_p9), %s739_s25, 5 }
   0xf   : > { %s484_s19 = scalar_lea.hbm (!%p216_p9), %s957_s6, %s572_s15 }
  0x10   : > { %s487_s28 = sshll.u32 (!%p216_p9), %s484_s19, 4  ;;  %s488_s28 = int_to_ptr.hbm [resolvable:$true] %s487_s28 }
  0x11   : > { %s630_s29 = sshra.s32 (!%p216_p9), %s488_s28, 4  ;;  %s631_s29 = int_to_ptr.hbm [resolvable:$true] %s630_s29 }
  0x12   : > { %s632_s9 = scalar_lea.hbm (!%p216_p9), %s631_s29, 32  ;;  %p637_p0 = scmp.lt.s32.totalorder (!%p216_p9), %s631_s29, %s957_s6 }
  0x13   : > { %v274_v0 = vld [vmem:[%s952_s1 + $0x78] sm:$0xff]  ;;  %v273_v2 = vld [vmem:[%s952_s1 + $0x70] sm:$0xff]  ;;  %v272_v4 = vld [vmem:[%s952_s1 + $0x68] sm:$0xff]  ;;  %s246_s26 = scalar_select %p245_p10, %s739_s25, 1  ;;  %vm401_vm0 = vcmask 1044480   ;;  %vm345_vm1 = vcmask 1043456  }
  0x14   : > { %v290_v1 = vld [vmem:[%s952_s1 + $0xf8] sm:$0xff]  ;;  %296 = vmatpush.msra.mxu0 %v274_v0  ;;  %v289_v3 = vld [vmem:[%s952_s1 + $0xf0] sm:$0xff]  ;;  %v288_v5 = vld [vmem:[%s952_s1 + $0xe8] sm:$0xff]  ;;  %vm338_vm2 = vcmask 31744   ;;  %v680_v48 = vmov 0   ;;  %vm394_vm3 = vcmask 171008   ;;  %p633_p11 = scmp.ne.s32.totalorder %s631_s29, %s632_s9 }
  0x15   : > { %316 = vmatpush.msra.mxu1 %v290_v1  ;;  %v271_v6 = vld [vmem:[%s952_s1 + $0x60] sm:$0xff]  ;;  %s571_s11 = sshll.u32 %s246_s26, 3  ;;  %v270_v8 = vld [vmem:[%s952_s1 + $0x58] sm:$0xff]  ;;  %v269_v10 = vld [vmem:[%s952_s1 + $0x50] sm:$0xff]  ;;  %615 = vset.pattern.permute.xlu0 %v680_v48  ;;  %s473_s25 = scalar_lea.sflag [#allocation3], %s242_s20 }
  0x16   : > { %297 = vmatpush.msra.mxu0 %v273_v2  ;;  %v287_v7 = vld [vmem:[%s952_s1 + $0xe0] sm:$0xff]  ;;  %v286_v9 = vld [vmem:[%s952_s1 + $0xd8] sm:$0xff]  ;;  %s249_s18 = scalar_lea.vmem %s951_s0, %s571_s11  ;;  %v285_v11 = vld [vmem:[%s952_s1 + $0xd0] sm:$0xff]  ;;  %p634_p12 = pnand %p633_p11, %p756_p5 }
  0x17   : > { %317 = vmatpush.msra.mxu1 %v289_v3  ;;  %v268_v12 = vld [vmem:[%s952_s1 + $0x48] sm:$0xff]  ;;  %v250_v14 = vld [vmem:[%s249_s18] sm:$0xff]  ;;  %v266_v17 = vld [vmem:[%s952_s1 + $0x38] sm:$0xff]  ;;  %s554_s18 = sshll.u32 %s242_s20, 5  ;;  %s636_s11 = scalar_lea.hbm %s957_s6, 64 }
  0x18   : > { %298 = vmatpush.msra.mxu0 %v272_v4  ;;  %v284_v13 = vld [vmem:[%s952_s1 + $0xc8] sm:$0xff]  ;;  %252 = vst [vmem:[#allocation1] ss:$2 sm:$0xff] %v250_v14  ;;  %v267_v15 = vld [vmem:[%s952_s1 + $0x40] sm:$0xff]  ;;  %v282_v18 = vld [vmem:[%s952_s1 + $0xb8] sm:$0xff]  ;;  %s895_s26 = scalar_lea.vmem [#allocation2], %s554_s18  ;;  %p635_p13 = pneg %p634_p12 }
  0x19   : > { %318 = vmatpush.msra.mxu1 %v288_v5  ;;  %v283_v16 = vld [vmem:[%s952_s1 + $0xc0] sm:$0xff]  ;;  %v265_v19 = vld [vmem:[%s952_s1 + $0x30] sm:$0xff]  ;;  %v264_v21 = vld [vmem:[%s952_s1 + $0x28] sm:$0xff]  ;;  %s485_s18 = sshll.u32 %s895_s26, 4  ;;  %p638_p1 = scmp.lt.s32.totalorder %s636_s11, %s632_s9  ;;  %s486_s18 = int_to_ptr.vmem [resolvable:$true] %s485_s18 }
  0x1a   : > { %299 = vmatpush.msra.mxu0 %v271_v6  ;;  %v281_v20 = vld [vmem:[%s952_s1 + $0xb0] sm:$0xff]  ;;  %v280_v22 = vld [vmem:[%s952_s1 + $0xa8] sm:$0xff]  ;;  %v263_v25 = vld [vmem:[%s952_s1 + $0x20] sm:$0xff] }
  0x1b   : > { %319 = vmatpush.msra.mxu1 %v287_v7  ;;  %v279_v26 = vld [vmem:[%s952_s1 + $0xa0] sm:$0xff]  ;;  %v262_v27 = vld [vmem:[%s952_s1 + $0x18] sm:$0xff]  ;;  %v261_v29 = vld [vmem:[%s952_s1 + $0x10] sm:$0xff]  ;;  %p639_p2 = por %p638_p1, %p637_p0 }
  0x1c   : > { %300 = vmatpush.msra.mxu0 %v270_v8  ;;  %v278_v28 = vld [vmem:[%s952_s1 + $0x98] sm:$0xff]  ;;  %v277_v30 = vld [vmem:[%s952_s1 + $0x90] sm:$0xff]  ;;  %v260_v31 = vld [vmem:[%s952_s1 + $0x8] sm:$0xff] }
  0x1d   : > { %320 = vmatpush.msra.mxu1 %v286_v9  ;;  %v276_v32 = vld [vmem:[%s952_s1 + $0x88] sm:$0xff]  ;;  %v259_v33 = vld [vmem:[%s952_s1] sm:$0xff]  ;;  %v379_v43 = vld [vmem:[%s953_s2 + $0x18] sm:$0xff]  ;;  %p640_p3 = pnand %p639_p2, %p635_p13 }
  0x1e   : > { %301 = vmatpush.msra.mxu0 %v269_v10  ;;  %v275_v34 = vld [vmem:[%s952_s1 + $0x80] sm:$0xff]  ;;  %v381_v42 = vld [vmem:[%s953_s2 + $0x28] sm:$0x1f]  ;;  %v378_v46 = vld [vmem:[%s953_s2 + $0x10] sm:$0xff] }
  0x1f   : > { %321 = vmatpush.msra.mxu1 %v285_v11  ;;  %v253_v23 = vld.sshfl [vmem:[#allocation1] sm:$0xff pattern:$0x75316420]  ;;  %v254_v24 = vld.sshfl [vmem:[#allocation1 + $0x8] sm:$0xff pattern:$0x75316420] }
  0x20   : > { %302 = vmatpush.msra.mxu0 %v268_v12  ;;  %291 = vst [vmem:[#allocation1] ss:$2 sm:$0xff] %v250_v14  ;;  %v380_v37 = vld [vmem:[%s953_s2 + $0x20] sm:$0x1f]  ;;  %v377_v44 = vld [vmem:[%s953_s2 + $0x8] sm:$0xff] }
  0x21   : > { %322 = vmatpush.msra.mxu1 %v284_v13  ;;  %560 = vmatpush.msk.msra.mxu3 %vm401_vm0, %v380_v37  ;;  %v336_v41 = vld [vmem:[%s954_s3] sm:$0xff]  ;;  %v337_v45 = vld [vmem:[%s954_s3 + $0x8] sm:$0xf]  ;;  %257 = vst [vmem:[%s895_s26] sm:$0xf] %v253_v23 }
  0x22   : > { %303 = vmatpush.msra.mxu0 %v267_v15  ;;  %v376_v47 = vld [vmem:[%s953_s2] sm:$0xff]  ;;  %258 = vst [vmem:[%s895_s26 + $0x8] sm:$0xf] %v254_v24  ;;  %v383_v50 = vld [vmem:[%s956_s5 + $0x8] sm:$0xf] }
  0x23   : > { %323 = vmatpush.msra.mxu1 %v283_v16  ;;  %422 = vmatpush.msra.mxu3 %v378_v46  ;;  %v382_v49 = vld [vmem:[%s956_s5] sm:$0xff]  ;;  %v373_v54 = vld [vmem:[%s955_s4 + $0x8] sm:$0xf] }
  0x24   : > { %304 = vmatpush.msra.mxu0 %v266_v17  ;;  %386 = vperm.xlu0 %615, %v382_v49   ;;  %v372_v51 = vld [vmem:[%s955_s4] sm:$0xff] }
  0x25   : > { %324 = vmatpush.msra.mxu1 %v282_v18  ;;  %423 = vmatpush.msra.mxu3 %v376_v47 }
  0x26   : > { %305 = vmatpush.msra.mxu0 %v265_v19 }
  0x27   : > { %325 = vmatpush.msra.mxu1 %v281_v20  ;;  %v292_v35 = vld.sshfl [vmem:[#allocation1] sm:$0xff pattern:$0x75316420]  ;;  %v293_v36 = vld.sshfl [vmem:[#allocation1 + $0x8] sm:$0xff pattern:$0x75316420] }
  0x28   : > { %306 = vmatpush.msra.mxu0 %v264_v21 }
  0x29   : > { %326 = vmatpush.msra.mxu1 %v280_v22 }
  0x2a   : > { %307 = vmatpush.msra.mxu0 %v263_v25 }
  0x2b   : > { %327 = vmatpush.msra.mxu1 %v279_v26 }
  0x2c   : > { %308 = vmatpush.msra.mxu0 %v262_v27  ;;  %391 = vperm.xlu0 %615, %v383_v50  }
  0x2d   : > { %328 = vmatpush.msra.mxu1 %v278_v28 }
  0x2e   : > { %309 = vmatpush.msra.mxu0 %v261_v29 }
  0x2f   : > { %329 = vmatpush.msra.mxu1 %v277_v30 }
  0x30   : > { %310 = vmatpush.msra.mxu0 %v260_v31 }
  0x31   : > { %330 = vmatpush.msra.mxu1 %v276_v32 }
  0x32   : > { %311 = vmatpush.msra.mxu0 %v259_v33 }
  0x33   : > { %331 = vmatpush.msra.mxu1 %v275_v34  ;;  %312 = vmatmul.f32.vlgmr.msra.gmra.mxu0 %v292_v35 }
  0x34   : > { %332 = vmatmul.f32.vlgmr.msra.gmra.mxu1 %v293_v36 }
  0x96   : > { %v387_v57 = vpop.permute.xlu0 %386 }
  0x9e   : > { %v392_v0 = vpop.permute.xlu0 %391 }
  0xb0   : > { %v313_v38 = vpop.f32.mrf.mxu0 }
  0xb1   : > { %v333_v39 = vpop.f32.mrf.mxu1 }
  0xb2   : > { %v334_v40 = vadd.f32 %v333_v39, %v313_v38 }
  0xb4   : > { %557 = vmatpush.msk.msra.mxu2 %vm345_vm1, %v334_v40 }
  0xb5   : > { %558 = vmatmul.msk.f32.vlgmr.msra.gmra.mxu2 %vm338_vm2, %v336_v41 }
  0xb6   : > { %563 = vmatpush.msk.msrb.mxu2 %vm401_vm0, %v381_v42 }
  0xb8   : > { %445 = vmatpush.msrb.mxu2 %v379_v43 }
  0xba   : > { %446 = vmatpush.msrb.mxu2 %v377_v44 }
  0xbd   : > { %559 = vmatmul.msk.f32.gmra.mxu2 %vm338_vm2, %v337_v45 }
 0x138   : > { %v366_v52 = vpop.f32.mrf.mxu2 }
 0x139   : > { %v374_v53 = vmul.f32 %v372_v51, %v366_v52 }
 0x13b   : > { %561 = vmatmul.msk.f32.vlgmr.msra.gmra.mxu3 %vm394_vm3, %v374_v53  ;;  %564 = vmatmul.msk.f32.vlgmr.msrb.gmra.mxu2 %vm394_vm3, %v374_v53 }
 0x140   : > { %v369_v55 = vpop.f32.mrf.mxu2 }
 0x141   : > { %v375_v56 = vmul.f32 %v373_v54, %v369_v55 }
 0x143   : > { %562 = vmatmul.msk.f32.gmra.mxu3 %vm394_vm3, %v375_v56  ;;  %565 = vmatmul.msk.f32.gmra.mxu2 %vm394_vm3, %v375_v56 }
 0x1be   : > { %v425_v58 = vpop.f32.mrf.mxu3  ;;  %v448_v59 = vpop.f32.mrf.mxu2 }
 0x1bf   : > { %v426_v60 = vadd.f32 %v425_v58, %v387_v57  ;;  %v449_v61 = vadd.f32 %v448_v59, %v387_v57 }
 0x1c1   : > { %v458_v62 = vrot.slane %v426_v60, 4  ;;  %v459_v63 = vrot.slane %v449_v61, 4 }
 0x1c3   : > { %468 = vst [vmem:[%s895_s26] sm:$0xf0] %v458_v62 }
 0x1c4   : > { %469 = vst [vmem:[%s895_s26 + $0x8] sm:$0xf0] %v459_v63 }
 0x1c6   : > { %v428_v1 = vpop.f32.mrf.mxu3  ;;  %v451_v2 = vpop.f32.mrf.mxu2 }
 0x1c7   : > { %v429_v3 = vadd.f32 %v428_v1, %v392_v0  ;;  %v452_v4 = vadd.f32 %v451_v2, %v392_v0 }
 0x1c9   : > { %v460_v5 = vrot.slane %v429_v3, 4  ;;  %v462_v6 = vrot.slane %v452_v4, 4 }
 0x1cb   : > { %v461_v7 = vsel %vm345_vm1, %v458_v62, %v460_v5  ;;  %v463_v8 = vsel %vm345_vm1, %v459_v63, %v462_v6 }
 0x1cc   : > { %470 = vst [vmem:[%s895_s26 + $0x10] sm:$0xff] %v461_v7 }
 0x1cd   : > { %471 = vst [vmem:[%s895_s26 + $0x18] sm:$0xff] %v463_v8 }
 0x1ce   : > { %643 = shalt.err (!%p640_p3)
}
 0x1cf   : > { %s681_s20 = smov 256   ;;  %s682_s26 = smov 16  }
 0x1d0   : > { %573 = dma.vmem_to_hbm [thread:$0]  (%p756_p5), %s486_s18, 512, %s488_s28, %s473_s25, %s681_s20, %s681_s20, %s682_s26  }
 0x1d1 PF: > { %p579_p4 = scmp.ge.s32.totalorder %s678_s24, 2  ;;  %s502_s15 = sand.u32 1, %s666_s21  }
 0x1d2   : > { %s503_s16 = scalar_lea.sflag [#allocation3], %s502_s15 }
 0x1d3   : > { %p576_p7 = pnand %p579_p4, %p760_p6 }
 0x1d5   : > { %p577_p8 = pneg %p576_p7 }
 0x1d7   : > { %661 = dma.done.wait (%p577_p8), %s503_s16, 512  }
 0x1d8   : > { %663 = vsyncadd (%p577_p8), %s503_s16, 4294966784  ;;  %p16_p9 = scmp.ge.s32.totalorder %s743_s27, 4   ;;  %s960_s21 = smov %s670_s22 }
 0x1d9   : > { %s961_s22 = smov %s674_s23  ;;  %s962_s23 = smov %s754_s30 }
 0x1da   : > { %s963_s24 = smov %s743_s27  ;;  %18 = sbr.rel (!%p16_p9) target bundleno = 3 (0x3), region = 79 }
 0x1df   :  { %509 = vsyncpa [#allocation3], 1 }
 0x1e0   :  { %511 = vsyncpa [#allocation3 + $0x1], 1 }

</bundles_post_ra>
